<compile_context>
chip_gen: v7x
topology: tpu7x:2x2x1
jax: 0.10.0
libtpu: 0.0.40
codegen_flags: <defaults>
</compile_context>

<pallas_src>
import functools

import jax
import jax.numpy as jnp
from jax.experimental import pallas as pl
from jax.experimental.pallas import tpu as pltpu


def _class_embed_concat_kernel(cls_hbm, x_hbm, o_hbm, sem, *, batch_block):
    # cls_hbm : (B, 1, D)     full HBM ref (class tokens)
    # x_hbm   : (B, S, D)     full HBM ref (patch tokens)
    # o_hbm   : (B, S+1, D)   full HBM ref (output)
    # sem     : DMA semaphore array of shape (2,)
    b0 = pl.program_id(0) * batch_block
    seq = x_hbm.shape[1]

    # class token rows -> output sequence position 0
    cls_cp = pltpu.make_async_copy(
        cls_hbm.at[pl.ds(b0, batch_block), pl.ds(0, 1), :],
        o_hbm.at[pl.ds(b0, batch_block), pl.ds(0, 1), :],
        sem.at[0],
    )
    # patch tokens -> output sequence positions 1 .. S
    x_cp = pltpu.make_async_copy(
        x_hbm.at[pl.ds(b0, batch_block), pl.ds(0, seq), :],
        o_hbm.at[pl.ds(b0, batch_block), pl.ds(1, seq), :],
        sem.at[1],
    )
    cls_cp.start()
    x_cp.start()
    cls_cp.wait()
    x_cp.wait()


def class_embedding_forward(class_embedding, x, *, batch_block=None):
    """class_embedding: (B, 1, D), x: (B, S, D) -> (B, S+1, D) (== cat along seq)."""
    B, S, D = x.shape
    assert class_embedding.shape == (B, 1, D), class_embedding.shape
    assert class_embedding.dtype == x.dtype, "torch.cat requires matching dtypes"
    # D that is a multiple of 128 keeps the HBM copies lane-dense; the DMA is
    # still correct for other D, just less efficient.

    if batch_block is None:
        # A handful of grid steps: enough to shard across v7x's two TensorCores,
        # few enough that per-step overhead is negligible vs. the per-step DMA.
        target_blocks = min(B, 8)
        while B % target_blocks:
            target_blocks -= 1
        batch_block = B // target_blocks
    assert B % batch_block == 0
    num_blocks = B // batch_block

    itemsize = jnp.dtype(x.dtype).itemsize
    cost = pl.CostEstimate(
        flops=0,
        transcendentals=0,
        bytes_accessed=(B * S * D + B * D + B * (S + 1) * D) * itemsize,
    )

    kernel = functools.partial(_class_embed_concat_kernel, batch_block=batch_block)

    return pl.pallas_call(
        kernel,
        out_shape=jax.ShapeDtypeStruct((B, S + 1, D), x.dtype),
        grid_spec=pltpu.PrefetchScalarGridSpec(
            num_scalar_prefetch=0,
            grid=(num_blocks,),
            in_specs=[
                pl.BlockSpec(memory_space=pl.ANY),   # class token stays in HBM
                pl.BlockSpec(memory_space=pl.ANY),   # x stays in HBM
            ],
            out_specs=pl.BlockSpec(memory_space=pl.ANY),  # output written via DMA
            scratch_shapes=[pltpu.SemaphoreType.DMA((2,))],
        ),
        compiler_params=pltpu.CompilerParams(
            dimension_semantics=("parallel",),
            has_side_effects=True,
        ),
        cost_estimate=cost,
    )(class_embedding, x)


def make_class_embedding(key, embedding_dim, batch_size, dtype=jnp.float32):
    """Mirror the PyTorch __init__: one randn (1, D) row stacked batch_size times.

    The parameter is kept at its PyTorch shape (B, 1, D) so forward semantics
    (cat of the *parameter* with x) are preserved even if rows diverge in training.
    """
    row = jax.random.normal(key, (1, embedding_dim), dtype=dtype)        # (1, D)
    return jnp.broadcast_to(row[None, :, :], (batch_size, 1, embedding_dim))


if __name__ == "__main__":
    batch = 2
    seq = 8
    embedding_dim = 128

    key = jax.random.PRNGKey(0)
    k_param, k_x = jax.random.split(key)

    class_embedding = make_class_embedding(k_param, embedding_dim, batch)
    x = jax.random.normal(k_x, (batch, seq, embedding_dim), dtype=jnp.float32)

    out = jax.block_until_ready(class_embedding_forward(class_embedding, x))

    # Reference: plain JAX concatenate along the sequence axis (exact copy).
    ref = jnp.concatenate([class_embedding, x], axis=1)
    assert out.shape == (batch, seq + 1, embedding_dim)
    assert jnp.array_equal(out, ref), "mismatch vs reference concat"

    print("KERNEL_OK")
</pallas_src>

<mosaic_0001>
module attributes {stable_mosaic.version = 11 : i64} {
  func.func @_class_embed_concat_kernel(%arg0: i32, %arg1: memref<2x1x128xf32, #tpu.memory_space<any>>, %arg2: memref<2x8x128xf32, #tpu.memory_space<any>>, %arg3: memref<2x9x128xf32, #tpu.memory_space<any>>, %arg4: memref<2x!tpu.dma_semaphore, #tpu.memory_space<semaphore_mem>>) attributes {dimension_semantics = [#tpu.dimension_semantics<parallel>], iteration_bounds = array<i64: 2>, scalar_prefetch = 0 : i64, scratch_operands = 1 : i64, tpu.core_type = #tpu.core_type<tc>, window_params = [{}, {}, {}]} {
    %c1_i32 = arith.constant 1 : i32
    %0 = arith.muli %arg0, %c1_i32 : i32
    %c0_i32 = arith.constant 0 : i32
    %c0_i32_0 = arith.constant 0 : i32
    %c0_i32_1 = arith.constant 0 : i32
    %1 = tpu.memref_slice %arg1[%0, %c0_i32_0, %c0_i32_1] : memref<2x1x128xf32, #tpu.memory_space<any>> -> memref<1x1x128xf32, #tpu.memory_space<any>>
    %c0_i32_2 = arith.constant 0 : i32
    %c0_i32_3 = arith.constant 0 : i32
    %2 = tpu.memref_slice %arg3[%0, %c0_i32_2, %c0_i32_3] : memref<2x9x128xf32, #tpu.memory_space<any>> -> memref<1x1x128xf32, #tpu.memory_space<any>>
    %3 = tpu.memref_slice %arg4[%c0_i32] : memref<2x!tpu.dma_semaphore, #tpu.memory_space<semaphore_mem>> -> memref<1x!tpu.dma_semaphore, #tpu.memory_space<semaphore_mem>>
    %4 = tpu.memref_squeeze %3 : memref<1x!tpu.dma_semaphore, #tpu.memory_space<semaphore_mem>> -> memref<!tpu.dma_semaphore, #tpu.memory_space<semaphore_mem>>
    tpu.enqueue_dma source(%1 : memref<1x1x128xf32, #tpu.memory_space<any>>) target(%2 : memref<1x1x128xf32, #tpu.memory_space<any>>) target_semaphore(%4 : memref<!tpu.dma_semaphore, #tpu.memory_space<semaphore_mem>>)
    %c1_i32_4 = arith.constant 1 : i32
    %c0_i32_5 = arith.constant 0 : i32
    %c0_i32_6 = arith.constant 0 : i32
    %5 = tpu.memref_slice %arg2[%0, %c0_i32_5, %c0_i32_6] : memref<2x8x128xf32, #tpu.memory_space<any>> -> memref<1x8x128xf32, #tpu.memory_space<any>>
    %c1_i32_7 = arith.constant 1 : i32
    %c0_i32_8 = arith.constant 0 : i32
    %6 = tpu.memref_slice %arg3[%0, %c1_i32_7, %c0_i32_8] : memref<2x9x128xf32, #tpu.memory_space<any>> -> memref<1x8x128xf32, #tpu.memory_space<any>>
    %7 = tpu.memref_slice %arg4[%c1_i32_4] : memref<2x!tpu.dma_semaphore, #tpu.memory_space<semaphore_mem>> -> memref<1x!tpu.dma_semaphore, #tpu.memory_space<semaphore_mem>>
    %8 = tpu.memref_squeeze %7 : memref<1x!tpu.dma_semaphore, #tpu.memory_space<semaphore_mem>> -> memref<!tpu.dma_semaphore, #tpu.memory_space<semaphore_mem>>
    tpu.enqueue_dma source(%5 : memref<1x8x128xf32, #tpu.memory_space<any>>) target(%6 : memref<1x8x128xf32, #tpu.memory_space<any>>) target_semaphore(%8 : memref<!tpu.dma_semaphore, #tpu.memory_space<semaphore_mem>>)
    %c0_i32_9 = arith.constant 0 : i32
    %c0_i32_10 = arith.constant 0 : i32
    %c0_i32_11 = arith.constant 0 : i32
    %9 = tpu.memref_slice %arg1[%0, %c0_i32_10, %c0_i32_11] : memref<2x1x128xf32, #tpu.memory_space<any>> -> memref<1x1x128xf32, #tpu.memory_space<any>>
    %c0_i32_12 = arith.constant 0 : i32
    %c0_i32_13 = arith.constant 0 : i32
    %10 = tpu.memref_slice %arg3[%0, %c0_i32_12, %c0_i32_13] : memref<2x9x128xf32, #tpu.memory_space<any>> -> memref<1x1x128xf32, #tpu.memory_space<any>>
    %11 = tpu.memref_slice %arg4[%c0_i32_9] : memref<2x!tpu.dma_semaphore, #tpu.memory_space<semaphore_mem>> -> memref<1x!tpu.dma_semaphore, #tpu.memory_space<semaphore_mem>>
    %12 = tpu.memref_squeeze %11 : memref<1x!tpu.dma_semaphore, #tpu.memory_space<semaphore_mem>> -> memref<!tpu.dma_semaphore, #tpu.memory_space<semaphore_mem>>
    tpu.wait_dma2 semaphore(%12 : memref<!tpu.dma_semaphore, #tpu.memory_space<semaphore_mem>>) src(%9 : memref<1x1x128xf32, #tpu.memory_space<any>>) dst(%10 : memref<1x1x128xf32, #tpu.memory_space<any>>)
    %c1_i32_14 = arith.constant 1 : i32
    %c0_i32_15 = arith.constant 0 : i32
    %c0_i32_16 = arith.constant 0 : i32
    %13 = tpu.memref_slice %arg2[%0, %c0_i32_15, %c0_i32_16] : memref<2x8x128xf32, #tpu.memory_space<any>> -> memref<1x8x128xf32, #tpu.memory_space<any>>
    %c1_i32_17 = arith.constant 1 : i32
    %c0_i32_18 = arith.constant 0 : i32
    %14 = tpu.memref_slice %arg3[%0, %c1_i32_17, %c0_i32_18] : memref<2x9x128xf32, #tpu.memory_space<any>> -> memref<1x8x128xf32, #tpu.memory_space<any>>
    %15 = tpu.memref_slice %arg4[%c1_i32_14] : memref<2x!tpu.dma_semaphore, #tpu.memory_space<semaphore_mem>> -> memref<1x!tpu.dma_semaphore, #tpu.memory_space<semaphore_mem>>
    %16 = tpu.memref_squeeze %15 : memref<1x!tpu.dma_semaphore, #tpu.memory_space<semaphore_mem>> -> memref<!tpu.dma_semaphore, #tpu.memory_space<semaphore_mem>>
    tpu.wait_dma2 semaphore(%16 : memref<!tpu.dma_semaphore, #tpu.memory_space<semaphore_mem>>) src(%13 : memref<1x8x128xf32, #tpu.memory_space<any>>) dst(%14 : memref<1x8x128xf32, #tpu.memory_space<any>>)
    return
  }
}

</mosaic_0001>

<bundles_post_ra>
// kernel: tpu_custom_call.1
= control target key start
LH: loop header
LB: loop body
LE: loop exit
PB: predicated region body
PF: predicated region fallthrough
CT: control target
= control target key end

     0   :  { %s172_s9 = smov 0   ;;  %s213_s0 = inlined_call_operand.hbm [shape: f32[2,1,128], index: 0, kind: input, shape index: {}]   ;;  %s214_s1 = inlined_call_operand.hbm [shape: f32[2,8,128], index: 1, kind: input, shape index: {}]   ;;  %s215_s2 = inlined_call_operand.vmem [shape: f32[2,9,128], index: 2, kind: output, shape index: {}]  }
   0x1 LB: > { %s81_s10 = sshll.u32 %s155_s9, 4  ;;  %s88_s11 = sshll.u32 %s155_s9, 7  ;;  %s155_s9 = sphi %s172_s9, %s12_s9  }
   0x2   : > { %s15_s14 = scalar_lea.hbm %s213_s0, %s81_s10  ;;  %s17_s17 = scalar_lea.vmem %s215_s2, %s81_s10 }
   0x3   : > { %s25_s18 = sshll.u32 %s17_s17, 4  ;;  %s188_s21 = scalar_lea.hbm %s214_s1, %s88_s11  ;;  %s26_s18 = int_to_ptr.vmem [resolvable:$true] %s25_s18 }
   0x4   : > { %s75_s22 = scalar_lea.vmem %s17_s17, 1  ;;  %s97_s23 = scalar_lea.hbm %s15_s14, 16 }
   0x5   : > { %p98_p0 = scmp.ne.s32.totalorder %s15_s14, %s97_s23  ;;  %s99_s26 = scalar_lea.hbm %s213_s0, 32 }
   0x6   : > { %p100_p1 = scmp.lt.u32.totalorder %s15_s14, %s213_s0  ;;  %p101_p2 = scmp.lt.u32.totalorder %s99_s26, %s97_s23 }
   0x7   : > { %p103_p4 = scmp.lt.u32.totalorder %s97_s23, %s15_s14 }
   0x8   : > { %p102_p3 = por %p101_p2, %p100_p1 }
   0xa   : > { %p104_p5 = por %p103_p4, %p102_p3 }
   0xc   : > { %p105_p6 = pnand %p104_p5, %p98_p0 }
   0xe   : > { %108 = shalt.err (!%p105_p6)  }
   0xf   : > { %s109_s29 = scalar_lea.vmem %s26_s18, 16  ;;  %s111_s4 = sshll.u32 %s215_s2, 4  ;;  %s112_s4 = int_to_ptr.vmem [resolvable:$false] %s111_s4 }
  0x10   : > { %p110_p7 = scmp.ne.s32.totalorder %s26_s18, %s109_s29  ;;  %s113_s5 = scalar_lea.vmem %s112_s4, 512 }
  0x11   : > { %p114_p8 = scmp.lt.s32.totalorder %s26_s18, %s112_s4  ;;  %p115_p9 = scmp.lt.s32.totalorder %s113_s5, %s109_s29 }
  0x13   : > { %p116_p10 = por %p115_p9, %p114_p8 }
  0x15   : > { %p117_p11 = pnand %p116_p10, %p110_p7 }
  0x17   : > { %120 = shalt.err (!%p117_p11)  }
  0x18   : > { %28 = dma.hbm_to_vmem [thread:$0]  %s15_s14, 16, %s26_s18, [#allocation2] }
  0x19   : > { %s42_s6 = sshll.u32 %s75_s22, 4  ;;  %s121_s7 = scalar_lea.hbm %s188_s21, 128  ;;  %s43_s6 = int_to_ptr.vmem [resolvable:$true] %s42_s6 }
  0x1a   : > { %p122_p12 = scmp.ne.s32.totalorder %s188_s21, %s121_s7  ;;  %s123_s11 = scalar_lea.hbm %s214_s1, 256 }
  0x1b   : > { %p124_p13 = scmp.lt.u32.totalorder %s188_s21, %s214_s1  ;;  %p125_p0 = scmp.lt.u32.totalorder %s123_s11, %s121_s7 }
  0x1c   : > { %p127_p2 = scmp.lt.u32.totalorder %s121_s7, %s188_s21 }
  0x1d   : > { %p126_p1 = por %p125_p0, %p124_p13 }
  0x1f   : > { %p128_p3 = por %p127_p2, %p126_p1 }
  0x21   : > { %p129_p4 = pnand %p128_p3, %p122_p12 }
  0x23   : > { %132 = shalt.err (!%p129_p4)  }
  0x24   : > { %s133_s14 = scalar_lea.vmem %s43_s6, 128  ;;  %p138_p6 = scmp.lt.s32.totalorder %s43_s6, %s112_s4 }
  0x25   : > { %p134_p5 = scmp.ne.s32.totalorder %s43_s6, %s133_s14  ;;  %p139_p7 = scmp.lt.s32.totalorder %s113_s5, %s133_s14 }
  0x27   : > { %p140_p8 = por %p139_p7, %p138_p6 }
  0x29   : > { %p141_p9 = pnand %p140_p8, %p134_p5 }
  0x2b   : > { %144 = shalt.err (!%p141_p9)  }
  0x2c   : > { %45 = dma.hbm_to_vmem [thread:$0]  %s188_s21, 128, %s43_s6, [#allocation2 + $0x1] }
  0x2d   : > { %149 = dma.done.wait [#allocation2], 16 }
  0x2e   : > { %150 = vsyncadd [#allocation2], 4294967280 }
  0x2f   : > { %151 = dma.done.wait [#allocation2 + $0x1], 128 }
  0x30   : > { %152 = vsyncadd [#allocation2 + $0x1], 4294967168  ;;  %s12_s9 = sadd.s32 1, %s155_s9  }
  0x31   : > { %p9_p10 = scmp.ge.s32.totalorder %s12_s9, 2  }
  0x33   :  { %11 = sbr.rel (!%p9_p10) target bundleno = 1 (0x1), region = 33 }
  0x3a   :  { %54 = vsyncmov [#allocation2] }
  0x3d   :  { %s55_s15 = vpop.sfrf %54 }
  0x3e   :  { %p86_p11 = scmp.ne.s32.totalorder %s55_s15, 0 }
  0x40   :  { %59 = shalt.err (%p86_p11)  }
  0x41   :  { %61 = vsyncmov [#allocation2 + $0x1] }
  0x44   :  { %s62_s16 = vpop.sfrf %61 }
  0x45   :  { %p87_p12 = scmp.ne.s32.totalorder %s62_s16, 0 }
  0x47   :  { %66 = shalt.err (%p87_p12)  }

</bundles_post_ra>
